<compile_context>
chip_gen: v7x
topology: tpu7x:2x2x1
jax: 0.10.0
libtpu: 0.0.40
codegen_flags: <defaults>
</compile_context>

<pallas_src>
import jax
import jax.numpy as jnp
from jax.experimental import pallas as pl
from jax.experimental.pallas import tpu as pltpu


_OUT_LANES = 8            # lanes 0:2 = actor probs, lane 2 = critic value, 3:8 unused
_BLOCK_ROWS = 512         # max rows per grid step in the large-batch path
_GRIDLESS_MAX_ROWS = 512  # whole-slab (no-grid) kernel up to this many rows


def _round_up(x, m):
    return -(-x // m) * m


def _net_kernel(x_ref, w1_ref, b1_ref, wh_ref, bh_ref, out_ref):
    x = x_ref[...]                                   # (BLK, 4): raw states, no lane pad

    # --- preNet: Linear(4,256) + ReLU, on the VPU (K=4 -> 4 broadcast-FMAs) ---
    acc = x[:, 0:1] * w1_ref[0:1, :]
    acc = acc + x[:, 1:2] * w1_ref[1:2, :]
    acc = acc + x[:, 2:3] * w1_ref[2:3, :]
    acc = acc + x[:, 3:4] * w1_ref[3:4, :]
    h = jnp.maximum(acc + b1_ref[...], 0.0)          # (BLK, 256)

    # --- fused actor+critic head: one (BLK,256)x(256,128) MXU matmul ----------
    # lanes 0:2 = actor logits, lane 2 = critic value.  DEFAULT matmul precision
    # (f32 operands); accuracy is plenty for the 2-way softmax / value head.
    z = jnp.dot(h, wh_ref[...], preferred_element_type=jnp.float32) + bh_ref[...]

    lane = jax.lax.broadcasted_iota(jnp.int32, z.shape, 1)
    is_actor = lane < 2                              # explicit mask, no -1e30 bias trick
    logits = jnp.where(is_actor, z, -1e30)
    m = jnp.max(logits, axis=-1, keepdims=True)
    e = jnp.where(is_actor, jnp.exp(logits - m), 0.0)
    s = jnp.sum(e, axis=-1, keepdims=True)
    probs = e * pl.reciprocal(s, approx=True)        # EUP slot; ~2^-12 rel error

    res = jnp.where(is_actor, probs, z)              # (BLK, 128)
    out_ref[...] = res[:, : out_ref.shape[-1]]       # store only the 8 useful lanes


def prepare_params(params):
    """One-time padding of the PyTorch-layout weights into TPU-friendly slabs."""
    w1, b1, wa, ba, wc, bc = params  # (256,4),(256,),(2,256),(2,),(1,256),(1,)
    w1_pad = jnp.zeros((8, 256), jnp.float32).at[:4, :].set(w1.T.astype(jnp.float32))
    b1_pad = b1.reshape(1, 256).astype(jnp.float32)
    wh_pad = (jnp.zeros((256, 128), jnp.float32)
              .at[:, 0:2].set(wa.T.astype(jnp.float32))
              .at[:, 2:3].set(wc.T.astype(jnp.float32)))
    bh_pad = (jnp.zeros((1, 128), jnp.float32)
              .at[0, 0:2].set(ba.astype(jnp.float32))
              .at[0, 2:3].set(bc.astype(jnp.float32)))
    return (w1_pad, b1_pad, wh_pad, bh_pad)


@jax.jit
def net_forward(x, prepared):
    """x: (4,) single state or (B,4) batch. Returns (actor, critic):
    shapes (2,),(1,) for a single state, (B,2),(B,1) for a batch."""
    w1_pad, b1_pad, wh_pad, bh_pad = prepared
    single = x.ndim == 1
    xb = (x.reshape(1, -1) if single else x).astype(jnp.float32)
    B = xb.shape[0]

    if B <= _GRIDLESS_MAX_ROWS:
        # Whole-slab, gridless kernel: no pipeline bookkeeping at all.  Entire
        # working set (< ~1.5 MiB incl. intermediates) trivially fits VMEM.
        Bp = _round_up(B, 8)
        x_pad = jnp.zeros((Bp, 4), jnp.float32).at[:B, :].set(xb)
        vmem = pl.BlockSpec(memory_space=pltpu.MemorySpace.VMEM)
        out = pl.pallas_call(
            _net_kernel,
            out_shape=jax.ShapeDtypeStruct((Bp, _OUT_LANES), jnp.float32),
            in_specs=[vmem] * 5,
            out_specs=vmem,
        )(x_pad, w1_pad, b1_pad, wh_pad, bh_pad)
    else:
        # Large batch: big row blocks (<=512) and an even grid length so v7x's two
        # TensorCores split the "parallel" axis evenly; v5e/v6e just loop steps.
        n_blk = -(-B // _BLOCK_ROWS)
        if n_blk % 2:
            n_blk += 1
        blk = _round_up(-(-B // n_blk), 8)
        Bp = n_blk * blk
        x_pad = jnp.zeros((Bp, 4), jnp.float32).at[:B, :].set(xb)

        def full(shape):
            # Grid-invariant weight slabs: constant block index -> DMAed once.
            return pl.BlockSpec(shape, lambda i: (0, 0))

        out = pl.pallas_call(
            _net_kernel,
            out_shape=jax.ShapeDtypeStruct((Bp, _OUT_LANES), jnp.float32),
            grid=(n_blk,),
            in_specs=[pl.BlockSpec((blk, 4), lambda i: (i, 0)),
                      full((8, 256)), full((1, 256)),
                      full((256, 128)), full((1, 128))],
            out_specs=pl.BlockSpec((blk, _OUT_LANES), lambda i: (i, 0)),
            compiler_params=pltpu.CompilerParams(
                dimension_semantics=("parallel",)),
        )(x_pad, w1_pad, b1_pad, wh_pad, bh_pad)

    actor = out[:B, 0:2]
    critic = out[:B, 2:3]
    if single:
        return actor[0], critic[0]
    return actor, critic


def init_params(key):
    """Deterministic init mimicking torch.nn.Linear defaults (U[-1/sqrt(fan_in), +])."""
    ks = jax.random.split(key, 6)

    def lin(kw, kb, out_f, in_f):
        bound = 1.0 / jnp.sqrt(jnp.float32(in_f))
        w = jax.random.uniform(kw, (out_f, in_f), jnp.float32, -bound, bound)
        b = jax.random.uniform(kb, (out_f,), jnp.float32, -bound, bound)
        return w, b

    w1, b1 = lin(ks[0], ks[1], 256, 4)
    wa, ba = lin(ks[2], ks[3], 2, 256)
    wc, bc = lin(ks[4], ks[5], 1, 256)
    return (w1, b1, wa, ba, wc, bc)


def reference_forward(x, params):
    """Pure-JAX mirror of the PyTorch module for a single (4,) state."""
    w1, b1, wa, ba, wc, bc = params
    h = jnp.maximum(x @ w1.T + b1, 0.0)
    logits = h @ wa.T + ba                      # (2,)
    actor = jax.nn.softmax(logits, axis=0)      # Softmax(dim=0) on a (2,) vector
    critic = h @ wc.T + bc                      # (1,)
    return actor, critic


if __name__ == "__main__":
    key = jax.random.PRNGKey(0)
    k_params, k_x, k_xb, k_xg = jax.random.split(key, 4)
    params = init_params(k_params)
    prepared = prepare_params(params)           # padded once, device-resident

    # Tolerances account for the bf16-capable MXU head + approx EUP reciprocal.
    ATOL = 2e-3
    RTOL = 2e-3

    # --- single CartPole state: exact PyTorch forward semantics ---------------
    x = jax.random.normal(k_x, (4,), jnp.float32)
    actor, critic = net_forward(x, prepared)
    actor = jax.block_until_ready(actor)
    critic = jax.block_until_ready(critic)
    actor_ref, critic_ref = reference_forward(x, params)
    assert actor.shape == (2,) and critic.shape == (1,)
    assert jnp.allclose(actor, actor_ref, atol=ATOL, rtol=RTOL)
    assert jnp.allclose(critic, critic_ref, atol=ATOL, rtol=RTOL)

    # --- small batch: whole-slab gridless path ---------------------------------
    xb = jax.random.normal(k_xb, (16, 4), jnp.float32)
    actor_b, critic_b = net_forward(xb, prepared)
    actor_b = jax.block_until_ready(actor_b)
    critic_b = jax.block_until_ready(critic_b)
    actor_br, critic_br = jax.vmap(lambda s: reference_forward(s, params))(xb)
    assert actor_b.shape == (16, 2) and critic_b.shape == (16, 1)
    assert jnp.allclose(actor_b, actor_br, atol=ATOL, rtol=RTOL)
    assert jnp.allclose(critic_b, critic_br, atol=ATOL, rtol=RTOL)

    # --- larger batch: exercises the parallel gridded path (2 blocks) ----------
    xg = jax.random.normal(k_xg, (520, 4), jnp.float32)
    actor_g, critic_g = net_forward(xg, prepared)
    actor_g = jax.block_until_ready(actor_g)
    critic_g = jax.block_until_ready(critic_g)
    actor_gr, critic_gr = jax.vmap(lambda s: reference_forward(s, params))(xg)
    assert actor_g.shape == (520, 2) and critic_g.shape == (520, 1)
    assert jnp.allclose(actor_g, actor_gr, atol=ATOL, rtol=RTOL)
    assert jnp.allclose(critic_g, critic_gr, atol=ATOL, rtol=RTOL)

    print("KERNEL_OK")
</pallas_src>

<mosaic_0001>
module attributes {stable_mosaic.version = 11 : i64} {
  func.func @_net_kernel(%arg0: memref<8x4xf32, #tpu.memory_space<vmem>>, %arg1: memref<8x256xf32, #tpu.memory_space<vmem>>, %arg2: memref<1x256xf32, #tpu.memory_space<vmem>>, %arg3: memref<256x128xf32, #tpu.memory_space<vmem>>, %arg4: memref<1x128xf32, #tpu.memory_space<vmem>>, %arg5: memref<8x8xf32, #tpu.memory_space<vmem>>) attributes {dimension_semantics = [], scalar_prefetch = 0 : i64, scratch_operands = 0 : i64, tpu.core_type = #tpu.core_type<tc>} {
    %c0 = arith.constant 0 : index
    %c0_0 = arith.constant 0 : index
    %0 = vector.load %arg0[%c0, %c0_0] : memref<8x4xf32, #tpu.memory_space<vmem>>, vector<8x4xf32>
    %1 = vector.extract_strided_slice %0 {offsets = [0, 0], sizes = [8, 1], strides = [1, 1]} : vector<8x4xf32> to vector<8x1xf32>
    %c0_1 = arith.constant 0 : index
    %c0_2 = arith.constant 0 : index
    %2 = vector.load %arg1[%c0_1, %c0_2] : memref<8x256xf32, #tpu.memory_space<vmem>>, vector<1x256xf32>
    %3 = vector.broadcast %1 : vector<8x1xf32> to vector<8x256xf32>
    %4 = vector.broadcast %2 : vector<1x256xf32> to vector<8x256xf32>
    %5 = arith.mulf %3, %4 : vector<8x256xf32>
    %6 = vector.extract_strided_slice %0 {offsets = [0, 1], sizes = [8, 1], strides = [1, 1]} : vector<8x4xf32> to vector<8x1xf32>
    %c1 = arith.constant 1 : index
    %c0_3 = arith.constant 0 : index
    %7 = vector.load %arg1[%c1, %c0_3] : memref<8x256xf32, #tpu.memory_space<vmem>>, vector<1x256xf32>
    %8 = vector.broadcast %6 : vector<8x1xf32> to vector<8x256xf32>
    %9 = vector.broadcast %7 : vector<1x256xf32> to vector<8x256xf32>
    %10 = arith.mulf %8, %9 : vector<8x256xf32>
    %11 = arith.addf %5, %10 : vector<8x256xf32>
    %12 = vector.extract_strided_slice %0 {offsets = [0, 2], sizes = [8, 1], strides = [1, 1]} : vector<8x4xf32> to vector<8x1xf32>
    %c2 = arith.constant 2 : index
    %c0_4 = arith.constant 0 : index
    %13 = vector.load %arg1[%c2, %c0_4] : memref<8x256xf32, #tpu.memory_space<vmem>>, vector<1x256xf32>
    %14 = vector.broadcast %12 : vector<8x1xf32> to vector<8x256xf32>
    %15 = vector.broadcast %13 : vector<1x256xf32> to vector<8x256xf32>
    %16 = arith.mulf %14, %15 : vector<8x256xf32>
    %17 = arith.addf %11, %16 : vector<8x256xf32>
    %18 = vector.extract_strided_slice %0 {offsets = [0, 3], sizes = [8, 1], strides = [1, 1]} : vector<8x4xf32> to vector<8x1xf32>
    %c3 = arith.constant 3 : index
    %c0_5 = arith.constant 0 : index
    %19 = vector.load %arg1[%c3, %c0_5] : memref<8x256xf32, #tpu.memory_space<vmem>>, vector<1x256xf32>
    %20 = vector.broadcast %18 : vector<8x1xf32> to vector<8x256xf32>
    %21 = vector.broadcast %19 : vector<1x256xf32> to vector<8x256xf32>
    %22 = arith.mulf %20, %21 : vector<8x256xf32>
    %23 = arith.addf %17, %22 : vector<8x256xf32>
    %c0_6 = arith.constant 0 : index
    %c0_7 = arith.constant 0 : index
    %24 = vector.load %arg2[%c0_6, %c0_7] : memref<1x256xf32, #tpu.memory_space<vmem>>, vector<1x256xf32>
    %25 = vector.broadcast %24 : vector<1x256xf32> to vector<8x256xf32>
    %26 = arith.addf %23, %25 : vector<8x256xf32>
    %cst = arith.constant 0.000000e+00 : f32
    %27 = vector.broadcast %cst : f32 to vector<8x256xf32>
    %28 = arith.maximumf %26, %27 : vector<8x256xf32>
    %c0_8 = arith.constant 0 : index
    %c0_9 = arith.constant 0 : index
    %29 = vector.load %arg3[%c0_8, %c0_9] : memref<256x128xf32, #tpu.memory_space<vmem>>, vector<256x128xf32>
    %cst_10 = arith.constant dense<0.000000e+00> : vector<8x128xf32>
    %30 = tpu.matmul %28, %29, %cst_10 {dimension_numbers = #tpu.dot_dimension_numbers<[1], [0], [0], [1], [0, 0, 1, 1], [], []>} : vector<8x256xf32>, vector<256x128xf32>, vector<8x128xf32> -> vector<8x128xf32>
    %c0_11 = arith.constant 0 : index
    %c0_12 = arith.constant 0 : index
    %31 = vector.load %arg4[%c0_11, %c0_12] : memref<1x128xf32, #tpu.memory_space<vmem>>, vector<1x128xf32>
    %32 = vector.broadcast %31 : vector<1x128xf32> to vector<8x128xf32>
    %33 = arith.addf %30, %32 : vector<8x128xf32>
    %34 = tpu.iota {dimensions = array<i32: 1>} : vector<8x128xi32>
    %c2_i32 = arith.constant 2 : i32
    %35 = vector.broadcast %c2_i32 : i32 to vector<8x128xi32>
    %36 = arith.cmpi slt, %34, %35 : vector<8x128xi32>
    %cst_13 = arith.constant -1.000000e+30 : f32
    %37 = vector.broadcast %cst_13 : f32 to vector<8x128xf32>
    %38 = arith.select %36, %33, %37 : vector<8x128xi1>, vector<8x128xf32>
    %cst_14 = arith.constant dense<0xFF800000> : vector<8xf32>
    %39 = vector.multi_reduction <maximumf>, %38, %cst_14 [1] : vector<8x128xf32> to vector<8xf32>
    %40 = vector.shape_cast %39 : vector<8xf32> to vector<8x1xf32>
    %41 = vector.broadcast %40 : vector<8x1xf32> to vector<8x128xf32>
    %42 = arith.subf %38, %41 : vector<8x128xf32>
    %43 = math.exp %42 : vector<8x128xf32>
    %cst_15 = arith.constant 0.000000e+00 : f32
    %44 = vector.broadcast %cst_15 : f32 to vector<8x128xf32>
    %45 = arith.select %36, %43, %44 : vector<8x128xi1>, vector<8x128xf32>
    %cst_16 = arith.constant dense<0.000000e+00> : vector<8xf32>
    %46 = vector.multi_reduction <add>, %45, %cst_16 [1] : vector<8x128xf32> to vector<8xf32>
    %47 = vector.shape_cast %46 : vector<8xf32> to vector<8x1xf32>
    %48 = tpu.reciprocal %47 {approx = true} : vector<8x1xf32> -> vector<8x1xf32>
    %49 = vector.broadcast %48 : vector<8x1xf32> to vector<8x128xf32>
    %50 = arith.mulf %45, %49 : vector<8x128xf32>
    %51 = arith.select %36, %50, %33 : vector<8x128xi1>, vector<8x128xf32>
    %52 = vector.extract_strided_slice %51 {offsets = [0, 0], sizes = [8, 8], strides = [1, 1]} : vector<8x128xf32> to vector<8x8xf32>
    %c0_17 = arith.constant 0 : index
    %c0_18 = arith.constant 0 : index
    %53 = vector.load %arg5[%c0_17, %c0_18] : memref<8x8xf32, #tpu.memory_space<vmem>>, vector<8x8xf32>
    tpu.vector_store %arg5[%c0_17, %c0_18], %52 {strides = array<i32>} : memref<8x8xf32, #tpu.memory_space<vmem>>, vector<8x8xf32>,
    return
  }
}

</mosaic_0001>

<bundles_post_ra>
// kernel: net_forward.1
= control target key start
LH: loop header
LB: loop body
LE: loop exit
PB: predicated region body
PF: predicated region fallthrough
CT: control target
= control target key end

     0   :  { %10 = vsyncpa [#allocation3], 0  ;;  %s375_s18 = smov [#allocation2]   ;;  %s451_s0 = inlined_call_operand.vmem [shape: f32[8,4], index: 0, kind: input, shape index: {}]   ;;  %s452_s1 = inlined_call_operand.vmem [shape: f32[8,256], index: 1, kind: input, shape index: {}]   ;;  %s453_s2 = inlined_call_operand.vmem [shape: f32[1,256], index: 2, kind: input, shape index: {}]   ;;  %s454_s3 = inlined_call_operand.hbm [shape: f32[256,128], index: 3, kind: input, shape index: {}]   ;;  %s455_s4 = inlined_call_operand.vmem [shape: f32[1,128], index: 4, kind: input, shape index: {}]   ;;  %s456_s5 = inlined_call_operand.vmem [shape: f32[8,8], index: 5, kind: output, shape index: {}]  }
   0x1   :  { %s22_s19 = sshll.u32 %s375_s18, 4  ;;  %s351_s22 = scalar_lea.hbm %s454_s3, 4096  ;;  %s23_s19 = int_to_ptr.vmem [resolvable:$true] %s22_s19 }
   0x2   :  { %p352_p0 = scmp.ne.s32.totalorder %s454_s3, %s351_s22  ;;  %p355_p1 = scmp.lt.u32.totalorder %s351_s22, %s454_s3 }
   0x4   :  { %p357_p2 = pnand %p355_p1, %p352_p0 }
   0x6   :  { %360 = shalt.err (!%p357_p2)
}
   0x7   :  { %s361_s27 = scalar_lea.vmem %s23_s19, 4096  ;;  %p366_p4 = scmp.lt.s32.totalorder %s23_s19, %s23_s19 }
   0x8   :  { %p362_p3 = scmp.ne.s32.totalorder %s23_s19, %s361_s27  ;;  %p367_p5 = scmp.lt.s32.totalorder %s361_s27, %s361_s27 }
   0xa   :  { %p368_p6 = por %p367_p5, %p366_p4 }
   0xc   :  { %p369_p7 = pnand %p368_p6, %p362_p3 }
   0xe   :  { %372 = shalt.err (!%p369_p7)
}
   0xf   :  { %s376_s28 = smov 128   ;;  %s377_s29 = smov 8  }
  0x10   :  { %28 = dma.hbm_to_vmem [thread:$0]  %s454_s3, 4096, %s23_s19, [#allocation3], %s376_s28, %s376_s28, %s377_s29  }
  0x11   :  { %373 = dma.done.wait [#allocation3], 4096  }
  0x12   :  { %374 = vsyncadd [#allocation3], 4294963200  ;;  %v378_v0 = vmov 0   ;;  %v379_v1 = vmov 2   ;;  %v34_v2 = vld [vmem:[%s451_s0] sm:$0xff]  ;;  %v150_v4 = vld [vmem:[#allocation2 + $0x88] sm:$0xff]  ;;  %v42_v53 = vlaneseq }
  0x13   :  { %342 = vset.pattern.permute.xlu0 %v378_v0  ;;  %344 = vset.pattern.permute.xlu1 %v379_v1  ;;  %v149_v3 = vld [vmem:[#allocation2 + $0x80] sm:$0xff]  ;;  %v134_v7 = vld [vmem:[#allocation2 + $0x8] sm:$0xff]  ;;  %v151_v8 = vld [vmem:[#allocation2 + $0x90] sm:$0xff]  ;;  %v380_v17 = vmov 1   ;;  %v381_v18 = vmov 3   ;;  %vm257_vm1 = vcmask 64512  }
  0x14   :  { %38 = vperm.xlu0 %342, %v34_v2   ;;  %78 = vperm.xlu1 %344, %v34_v2   ;;  %v303_v5 = vpack.c.bf16 %v150_v4, %v149_v3  ;;  %v133_v6 = vld [vmem:[#allocation2] sm:$0xff]  ;;  %v152_v10 = vld [vmem:[#allocation2 + $0x98] sm:$0xff]  ;;  %v135_v11 = vld [vmem:[#allocation2 + $0x10] sm:$0xff]  ;;  %v43_v54 = vshrl.u32 %v42_v53, 7 }
  0x15   :  { %v305_v9 = vpack.c.bf16 %v134_v7, %v133_v6  ;;  %v136_v12 = vld [vmem:[#allocation2 + $0x18] sm:$0xff]  ;;  %v307_v13 = vpack.c.bf16 %v152_v10, %v151_v8  ;;  %v153_v14 = vld [vmem:[#allocation2 + $0xa0] sm:$0xff]  ;;  %v154_v15 = vld [vmem:[#allocation2 + $0xa8] sm:$0xff] }
  0x16   :  { %304 = vmatprep.subr.bf16.mxu0 %v303_v5  ;;  %v309_v16 = vpack.c.bf16 %v136_v12, %v135_v11  ;;  %v311_v19 = vpack.c.bf16 %v154_v15, %v153_v14  ;;  %v137_v20 = vld [vmem:[#allocation2 + $0x20] sm:$0xff]  ;;  %v138_v21 = vld [vmem:[#allocation2 + $0x28] sm:$0xff]  ;;  %v155_v22 = vld [vmem:[#allocation2 + $0xb0] sm:$0xff]  ;;  %v44_v55 = vsub.s32 0, %v43_v54  ;;  %v48_v56 = vsub.s32 1, %v43_v54 }
  0x17   :  { %306 = vmatpush3.bf16.msra.mxu0 %v305_v9  ;;  %v156_v23 = vld [vmem:[#allocation2 + $0xb8] sm:$0xff]  ;;  %v313_v24 = vpack.c.bf16 %v138_v21, %v137_v20  ;;  %v139_v26 = vld [vmem:[#allocation2 + $0x30] sm:$0xff]  ;;  %v157_v28 = vld [vmem:[#allocation2 + $0xc0] sm:$0xff] }
  0x18   :  { %343 = vset.pattern.permute.xlu0 %v380_v17  ;;  %345 = vset.pattern.permute.xlu1 %v381_v18  ;;  %v315_v25 = vpack.c.bf16 %v156_v23, %v155_v22  ;;  %v140_v27 = vld [vmem:[#allocation2 + $0x38] sm:$0xff]  ;;  %v158_v29 = vld [vmem:[#allocation2 + $0xc8] sm:$0xff]  ;;  %v141_v32 = vld [vmem:[#allocation2 + $0x40] sm:$0xff] }
  0x19   :  { %57 = vperm.xlu0 %343, %v34_v2   ;;  %99 = vperm.xlu1 %345, %v34_v2   ;;  %v317_v30 = vpack.c.bf16 %v140_v27, %v139_v26  ;;  %v319_v31 = vpack.c.bf16 %v158_v29, %v157_v28  ;;  %v142_v33 = vld [vmem:[#allocation2 + $0x48] sm:$0xff]  ;;  %v159_v34 = vld [vmem:[#allocation2 + $0xd0] sm:$0xff]  ;;  %v160_v35 = vld [vmem:[#allocation2 + $0xd8] sm:$0xff] }
  0x1a   :  { %308 = vmatprep.subr.bf16.mxu0 %v307_v13  ;;  %v321_v36 = vpack.c.bf16 %v142_v33, %v141_v32  ;;  %v323_v37 = vpack.c.bf16 %v160_v35, %v159_v34  ;;  %v143_v38 = vld [vmem:[#allocation2 + $0x50] sm:$0xff]  ;;  %v144_v39 = vld [vmem:[#allocation2 + $0x58] sm:$0xff]  ;;  %v161_v40 = vld [vmem:[#allocation2 + $0xe0] sm:$0xff] }
  0x1b   :  { %310 = vmatpush3.bf16.msra.mxu0 %v309_v16  ;;  %v162_v41 = vld [vmem:[#allocation2 + $0xe8] sm:$0xff]  ;;  %v325_v42 = vpack.c.bf16 %v144_v39, %v143_v38  ;;  %v145_v44 = vld [vmem:[#allocation2 + $0x60] sm:$0xff]  ;;  %v163_v46 = vld [vmem:[#allocation2 + $0xf0] sm:$0xff] }
  0x1c   :  { %312 = vmatprep.subr.bf16.mxu0 %v311_v19  ;;  %v327_v43 = vpack.c.bf16 %v162_v41, %v161_v40  ;;  %v146_v45 = vld [vmem:[#allocation2 + $0x68] sm:$0xff]  ;;  %v164_v47 = vld [vmem:[#allocation2 + $0xf8] sm:$0xff]  ;;  %v147_v50 = vld [vmem:[#allocation2 + $0x70] sm:$0xff] }
  0x1d   :  { %346 = vset.pattern.permute.xlu0 %v381_v18  ;;  %v329_v48 = vpack.c.bf16 %v146_v45, %v145_v44  ;;  %v331_v49 = vpack.c.bf16 %v164_v47, %v163_v46  ;;  %v148_v51 = vld [vmem:[#allocation2 + $0x78] sm:$0xff]  ;;  %v35_v57 = vld [vmem:[%s452_s1] ss:$8 sm:$0x3] }
  0x1e   :  { %v333_v52 = vpack.c.bf16 %v148_v51, %v147_v50  ;;  %v264_v58 = vld [vmem:[%s452_s1 + $0x1] ss:$8 sm:$0x3]  ;;  %v265_v60 = vld [vmem:[%s452_s1 + $0x2] ss:$8 sm:$0x3]  ;;  %v45_v63 = vrot.slane %v35_v57, %v44_v55  ;;  %v49_v0 = vrot.slane %v35_v57, %v48_v56 }
  0x1f   :  { %314 = vmatpush3.bf16.msra.mxu0 %v313_v24  ;;  %v266_v62 = vld [vmem:[%s452_s1 + $0x3] ss:$8 sm:$0x3]  ;;  %v64_v1 = vrot.slane %v264_v58, %v44_v55  ;;  %v68_v2 = vrot.slane %v264_v58, %v48_v56  ;;  %v85_v3 = vrot.slane %v265_v60, %v44_v55  ;;  %v89_v4 = vrot.slane %v265_v60, %v48_v56  ;;  %v117_v15 = vld [vmem:[%s453_s2] sm:$0x3] }
  0x20   :  { %316 = vmatprep.subr.bf16.mxu0 %v315_v25  ;;  %v106_v5 = vrot.slane %v266_v62, %v44_v55  ;;  %v110_v6 = vrot.slane %v266_v62, %v48_v56  ;;  %v122_v22 = vrot.slane %v117_v15, %v44_v55  ;;  %v126_v23 = vrot.slane %v117_v15, %v48_v56  ;;  %v267_v33 = vld [vmem:[%s455_s4] ss:$0 sm:$0xff] }
  0x23   :  { %318 = vmatpush3.bf16.msra.mxu0 %v317_v30  ;;  %v243_v30 = vand.u32 127, %v42_v53 }
  0x24   :  { %320 = vmatprep.subr.bf16.mxu0 %v319_v31 }
  0x25   :  { %vm244_vm0 = vcmp.lt.s32.totalorder %v243_v30, 2 }
  0x27   :  { %322 = vmatpush3.bf16.msra.mxu0 %v321_v36 }
  0x28   :  { %324 = vmatprep.subr.bf16.mxu0 %v323_v37 }
  0x2b   :  { %326 = vmatpush3.bf16.msra.mxu0 %v325_v42 }
  0x2c   :  { %328 = vmatprep.subr.bf16.mxu0 %v327_v43 }
  0x2f   :  { %330 = vmatpush3.bf16.msra.mxu0 %v329_v48 }
  0x30   :  { %332 = vmatprep.subr.bf16.mxu0 %v331_v49 }
  0x33   :  { %334 = vmatpush3.bf16.msra.mxu0 %v333_v52 }
  0x93   :  { %v39_v59 = vpop.permute.xlu0 %38  ;;  %v79_v61 = vpop.permute.xlu1 %78 }
  0x94   :  { %v52_v9 = vmul.f32 %v45_v63, %v39_v59  ;;  %v53_v10 = vmul.f32 %v49_v0, %v39_v59  ;;  %v92_v13 = vmul.f32 %v85_v3, %v79_v61  ;;  %v93_v14 = vmul.f32 %v89_v4, %v79_v61 }
  0x98   :  { %v58_v7 = vpop.permute.xlu0 %57  ;;  %v100_v8 = vpop.permute.xlu1 %99 }
  0x99   :  { %v71_v11 = vmul.f32 %v64_v1, %v58_v7  ;;  %v72_v12 = vmul.f32 %v68_v2, %v58_v7  ;;  %v113_v18 = vmul.f32 %v106_v5, %v100_v8  ;;  %v114_v19 = vmul.f32 %v110_v6, %v100_v8 }
  0x9b   :  { %v73_v16 = vadd.f32 %v71_v11, %v52_v9  ;;  %v74_v17 = vadd.f32 %v72_v12, %v53_v10 }
  0x9d   :  { %v94_v20 = vadd.f32 %v92_v13, %v73_v16  ;;  %v95_v21 = vadd.f32 %v93_v14, %v74_v17 }
  0x9f   :  { %v115_v24 = vadd.f32 %v113_v18, %v94_v20  ;;  %v116_v25 = vadd.f32 %v114_v19, %v95_v21 }
  0xa1   :  { %v130_v26 = vadd.f32 %v126_v23, %v116_v25  ;;  %v129_v27 = vadd.f32 %v122_v22, %v115_v24 }
  0xa3   :  { %v132_v28 = vmax.f32 %v130_v26, 0.0  ;;  %v131_v29 = vmax.f32 %v129_v27, 0.0 }
  0xa5   :  { %236 = vmatprep.mubr.f32.mxu0 %v132_v28 }
  0xa6   :  { %237 = vmatmul.mubr.f32.vlgmr.msra.gmra.mrb[0].mxu0 %v131_v29 }
 0x179   :  { %v300_v31 = vpop.f32.mrb[0].mxu0 }
 0x17a   :  { %v301_v32 = vpop.f32.mrb[1].mxu0 }
 0x17b   :  { %v302_v34 = vadd.f32 %v301_v32, %v300_v31 }
 0x17d   :  { %v239_v35 = vadd.f32 %v302_v34, %v267_v33 }
 0x17f   :  { %v245_v36 = vsel %vm244_vm0, %v239_v35, -1e+30 }
 0x180   :  { %246 = vmax.xlane.f32.xlu1 %v245_v36 }
 0x20d   :  { %v247_v37 = vpop.xlane.xlu1 %246 }
 0x20e   :  { %v248_v38 = vsub.f32 %v245_v36, %v247_v37 }
 0x210   :  { %v249_v39 = vmul.f32 1.442695, %v248_v38 }
 0x212   :  { %347 = vpow2.f32 %v249_v39 }
 0x21c   :  { %v348_v40 = vpop.eup %347 }
 0x21d   :  { %v251_v41 = vsel %vm244_vm0, %v348_v40, 0.0 }
 0x21e   :  { %252 = vadd.xlane.f32.xlu0 %v251_v41 }
 0x2ab   :  { %v253_v42 = vpop.xlane.xlu0 %252 }
 0x2ac   :  { %349 = vrcp.f32 %v253_v42 }
 0x2b6   :  { %v350_v43 = vpop.eup %349 }
 0x2b7   :  { %v255_v44 = vmul.f32 %v350_v43, %v251_v41 }
 0x2b9   :  { %v256_v45 = vsel %vm244_vm0, %v255_v44, %v239_v35 }
 0x2ba   :  { %258 = vst.msk [vmem:[%s456_s5] sm:$0xff] %vm257_vm1, %v256_v45 }
 0x2bb   :  { %263 = vsyncpa [#allocation3], 1 }

</bundles_post_ra>
